<compile_context>
chip_gen: v6e
topology: v6e:2x2x1
jax: 0.10.0
libtpu: 0.0.40
codegen_flags: <defaults>
</compile_context>

<pallas_src>
import jax
import jax.numpy as jnp
from jax.experimental import pallas as pl
from jax.experimental.pallas import tpu as pltpu


def _round_up(x, m):
    return ((x + m - 1) // m) * m


def edge_conv_kernel(src_ref, dest_ref, ea_ref,
                     w1s_ref, w1d_ref, w1e_ref, b1_ref,
                     w2_ref, b2_ref, out_ref):
    # Linear1 as three partial matmuls (replaces cat([src, dest, ea], dim=1)):
    #   h[hidden, tile] = W1s @ src + W1d @ dest + W1e @ ea + b1
    h = jnp.dot(w1s_ref[...], src_ref[...], preferred_element_type=jnp.float32)
    h = h + jnp.dot(w1d_ref[...], dest_ref[...], preferred_element_type=jnp.float32)
    h = h + jnp.dot(w1e_ref[...], ea_ref[...], preferred_element_type=jnp.float32)
    h = jnp.maximum(h + b1_ref[...], 0.0)                       # bias + ReLU (VPU)
    # Linear2:  o[edge_out, tile] = W2 @ h + b2
    o = jnp.dot(w2_ref[...], h, preferred_element_type=jnp.float32) + b2_ref[...]
    out_ref[...] = o.astype(out_ref.dtype)                      # lane-dense store


def edge_conv_layer(src, dest, edge_attr, w1, b1, w2, b2, *, tile_e=1024):
    """src, dest: [E, node_dim]; edge_attr: [E, edge_in].
    w1: [2*node_dim + edge_in, hidden], b1: [hidden] (or [1, hidden])
    w2: [hidden, edge_out],             b2: [edge_out] (or [1, edge_out])
    Returns [E, edge_out] (same semantics as the PyTorch module)."""
    E, node_dim = src.shape
    edge_in = edge_attr.shape[1]
    hidden = w1.shape[1]
    edge_out = w2.shape[1]

    # ---- lane-dense layout: edges on the lane axis ----------------------
    src_t = src.T            # [node_dim, E]
    dest_t = dest.T          # [node_dim, E]
    ea_t = edge_attr.T       # [edge_in,  E]

    # Edge tile: multiple of 128, capped by (padded) E; pad tail with zeros.
    tile = _round_up(min(tile_e, _round_up(E, 128)), 128)
    e_pad = _round_up(E, tile)
    if e_pad != E:
        pad = ((0, 0), (0, e_pad - E))
        src_t = jnp.pad(src_t, pad)
        dest_t = jnp.pad(dest_t, pad)
        ea_t = jnp.pad(ea_t, pad)

    # Pre-split / pre-transpose the parameters (tiny tensors, done in XLA).
    w1s = w1[:node_dim].T                      # [hidden, node_dim]
    w1d = w1[node_dim:2 * node_dim].T          # [hidden, node_dim]
    w1e = w1[2 * node_dim:].T                  # [hidden, edge_in]
    b1c = jnp.reshape(b1, (hidden, 1))         # [hidden, 1]
    w2t = w2.T                                 # [edge_out, hidden]
    b2c = jnp.reshape(b2, (edge_out, 1))       # [edge_out, 1]

    grid = (e_pad // tile,)

    out_t = pl.pallas_call(
        edge_conv_kernel,
        out_shape=jax.ShapeDtypeStruct((edge_out, e_pad), src.dtype),
        grid_spec=pl.GridSpec(
            grid=grid,
            in_specs=[
                pl.BlockSpec((node_dim, tile), lambda i: (0, i)),      # src^T tile
                pl.BlockSpec((node_dim, tile), lambda i: (0, i)),      # dest^T tile
                pl.BlockSpec((edge_in, tile), lambda i: (0, i)),       # edge_attr^T tile
                pl.BlockSpec((hidden, node_dim), lambda i: (0, 0)),    # W1 (src rows)^T
                pl.BlockSpec((hidden, node_dim), lambda i: (0, 0)),    # W1 (dest rows)^T
                pl.BlockSpec((hidden, edge_in), lambda i: (0, 0)),     # W1 (edge rows)^T
                pl.BlockSpec((hidden, 1), lambda i: (0, 0)),           # b1
                pl.BlockSpec((edge_out, hidden), lambda i: (0, 0)),    # W2^T
                pl.BlockSpec((edge_out, 1), lambda i: (0, 0)),         # b2
            ],
            out_specs=pl.BlockSpec((edge_out, tile), lambda i: (0, i)),
        ),
        compiler_params=pltpu.CompilerParams(
            dimension_semantics=("parallel",)),
    )(src_t, dest_t, ea_t, w1s, w1d, w1e, b1c, w2t, b2c)

    # Drop the pad and return in the module's [E, edge_out] orientation.
    return out_t[:, :E].T


def _reference(src, dest, edge_attr, w1, b1, w2, b2):
    x = jnp.concatenate([src, dest, edge_attr], axis=1)
    h = jnp.maximum(x @ w1 + jnp.reshape(b1, (1, -1)), 0.0)
    return h @ w2 + jnp.reshape(b2, (1, -1))


if __name__ == "__main__":
    # Small shapes consistent with the module's forward.
    E = 16                 # number of edges
    node_dim = 4           # node_feature_dim
    edge_in = 4            # edge_feature_dim_in
    hidden = 32            # edge_hidden_dim
    edge_out = 8           # edge_feature_dim_out
    in_dim = 2 * node_dim + edge_in

    key = jax.random.PRNGKey(0)
    ks = jax.random.split(key, 7)
    src = jax.random.normal(ks[0], (E, node_dim), jnp.float32)
    dest = jax.random.normal(ks[1], (E, node_dim), jnp.float32)
    edge_attr = jax.random.normal(ks[2], (E, edge_in), jnp.float32)

    # Synthetic params (PyTorch Linear weight is (out, in); stored here already
    # transposed so the math is x @ W + b).
    w1 = jax.random.normal(ks[3], (in_dim, hidden), jnp.float32) * 0.1
    b1 = jax.random.normal(ks[4], (hidden,), jnp.float32) * 0.1
    w2 = jax.random.normal(ks[5], (hidden, edge_out), jnp.float32) * 0.1
    b2 = jax.random.normal(ks[6], (edge_out,), jnp.float32) * 0.1

    out = edge_conv_layer(src, dest, edge_attr, w1, b1, w2, b2)
    out = jax.block_until_ready(out)
    ref = _reference(src, dest, edge_attr, w1, b1, w2, b2)
    assert out.shape == (E, edge_out)
    assert jnp.allclose(out, ref, atol=1e-5, rtol=1e-5), "mismatch vs reference"

    # Exercise a multi-step grid + ragged tail (E not a multiple of the tile).
    E2 = 300
    ks2 = jax.random.split(jax.random.PRNGKey(1), 3)
    src2 = jax.random.normal(ks2[0], (E2, node_dim), jnp.float32)
    dest2 = jax.random.normal(ks2[1], (E2, node_dim), jnp.float32)
    ea2 = jax.random.normal(ks2[2], (E2, edge_in), jnp.float32)
    out2 = jax.block_until_ready(
        edge_conv_layer(src2, dest2, ea2, w1, b1, w2, b2, tile_e=128))
    ref2 = _reference(src2, dest2, ea2, w1, b1, w2, b2)
    assert out2.shape == (E2, edge_out)
    assert jnp.allclose(out2, ref2, atol=1e-5, rtol=1e-5), "mismatch vs reference (padded)"

    print("KERNEL_OK")
</pallas_src>

<mosaic_0001>
module attributes {stable_mosaic.version = 11 : i64} {
  func.func @edge_conv_kernel(%arg0: i32, %arg1: memref<4x128xf32, #tpu.memory_space<vmem>>, %arg2: memref<4x128xf32, #tpu.memory_space<vmem>>, %arg3: memref<4x128xf32, #tpu.memory_space<vmem>>, %arg4: memref<32x4xf32, #tpu.memory_space<vmem>>, %arg5: memref<32x4xf32, #tpu.memory_space<vmem>>, %arg6: memref<32x4xf32, #tpu.memory_space<vmem>>, %arg7: memref<32x1xf32, #tpu.memory_space<vmem>>, %arg8: memref<8x32xf32, #tpu.memory_space<vmem>>, %arg9: memref<8x1xf32, #tpu.memory_space<vmem>>, %arg10: memref<8x128xf32, #tpu.memory_space<vmem>>) attributes {dimension_semantics = [#tpu.dimension_semantics<parallel>], iteration_bounds = array<i64: 1>, scalar_prefetch = 0 : i64, scratch_operands = 0 : i64, tpu.core_type = #tpu.core_type<tc>, window_params = [{transform_indices = @transform_0, window_bounds = array<i64: 4, 128>}, {transform_indices = @transform_1, window_bounds = array<i64: 4, 128>}, {transform_indices = @transform_2, window_bounds = array<i64: 4, 128>}, {pipeline_mode = #tpu.pipeline_mode<synchronous>, transform_indices = @transform_3, window_bounds = array<i64: 32, 4>}, {pipeline_mode = #tpu.pipeline_mode<synchronous>, transform_indices = @transform_4, window_bounds = array<i64: 32, 4>}, {pipeline_mode = #tpu.pipeline_mode<synchronous>, transform_indices = @transform_5, window_bounds = array<i64: 32, 4>}, {pipeline_mode = #tpu.pipeline_mode<synchronous>, transform_indices = @transform_6, window_bounds = array<i64: 32, 1>}, {pipeline_mode = #tpu.pipeline_mode<synchronous>, transform_indices = @transform_7, window_bounds = array<i64: 8, 32>}, {pipeline_mode = #tpu.pipeline_mode<synchronous>, transform_indices = @transform_8, window_bounds = array<i64: 8, 1>}, {transform_indices = @transform_9, window_bounds = array<i64: 8, 128>}]} {
    %c0 = arith.constant 0 : index
    %c0_0 = arith.constant 0 : index
    %0 = vector.load %arg4[%c0, %c0_0] : memref<32x4xf32, #tpu.memory_space<vmem>>, vector<32x4xf32>
    %c0_1 = arith.constant 0 : index
    %c0_2 = arith.constant 0 : index
    %1 = vector.load %arg1[%c0_1, %c0_2] : memref<4x128xf32, #tpu.memory_space<vmem>>, vector<4x128xf32>
    %cst = arith.constant dense<0.000000e+00> : vector<32x128xf32>
    %2 = tpu.matmul %0, %1, %cst {dimension_numbers = #tpu.dot_dimension_numbers<[1], [0], [0], [1], [0, 0, 1, 1], [], []>} : vector<32x4xf32>, vector<4x128xf32>, vector<32x128xf32> -> vector<32x128xf32>
    %c0_3 = arith.constant 0 : index
    %c0_4 = arith.constant 0 : index
    %3 = vector.load %arg5[%c0_3, %c0_4] : memref<32x4xf32, #tpu.memory_space<vmem>>, vector<32x4xf32>
    %c0_5 = arith.constant 0 : index
    %c0_6 = arith.constant 0 : index
    %4 = vector.load %arg2[%c0_5, %c0_6] : memref<4x128xf32, #tpu.memory_space<vmem>>, vector<4x128xf32>
    %cst_7 = arith.constant dense<0.000000e+00> : vector<32x128xf32>
    %5 = tpu.matmul %3, %4, %cst_7 {dimension_numbers = #tpu.dot_dimension_numbers<[1], [0], [0], [1], [0, 0, 1, 1], [], []>} : vector<32x4xf32>, vector<4x128xf32>, vector<32x128xf32> -> vector<32x128xf32>
    %6 = arith.addf %2, %5 : vector<32x128xf32>
    %c0_8 = arith.constant 0 : index
    %c0_9 = arith.constant 0 : index
    %7 = vector.load %arg6[%c0_8, %c0_9] : memref<32x4xf32, #tpu.memory_space<vmem>>, vector<32x4xf32>
    %c0_10 = arith.constant 0 : index
    %c0_11 = arith.constant 0 : index
    %8 = vector.load %arg3[%c0_10, %c0_11] : memref<4x128xf32, #tpu.memory_space<vmem>>, vector<4x128xf32>
    %cst_12 = arith.constant dense<0.000000e+00> : vector<32x128xf32>
    %9 = tpu.matmul %7, %8, %cst_12 {dimension_numbers = #tpu.dot_dimension_numbers<[1], [0], [0], [1], [0, 0, 1, 1], [], []>} : vector<32x4xf32>, vector<4x128xf32>, vector<32x128xf32> -> vector<32x128xf32>
    %10 = arith.addf %6, %9 : vector<32x128xf32>
    %c0_13 = arith.constant 0 : index
    %c0_14 = arith.constant 0 : index
    %11 = vector.load %arg7[%c0_13, %c0_14] : memref<32x1xf32, #tpu.memory_space<vmem>>, vector<32x1xf32>
    %12 = vector.broadcast %11 : vector<32x1xf32> to vector<32x128xf32>
    %13 = arith.addf %10, %12 : vector<32x128xf32>
    %cst_15 = arith.constant 0.000000e+00 : f32
    %14 = vector.broadcast %cst_15 : f32 to vector<32x128xf32>
    %15 = arith.maximumf %13, %14 : vector<32x128xf32>
    %c0_16 = arith.constant 0 : index
    %c0_17 = arith.constant 0 : index
    %16 = vector.load %arg8[%c0_16, %c0_17] : memref<8x32xf32, #tpu.memory_space<vmem>>, vector<8x32xf32>
    %cst_18 = arith.constant dense<0.000000e+00> : vector<8x128xf32>
    %17 = tpu.matmul %16, %15, %cst_18 {dimension_numbers = #tpu.dot_dimension_numbers<[1], [0], [0], [1], [0, 0, 1, 1], [], []>} : vector<8x32xf32>, vector<32x128xf32>, vector<8x128xf32> -> vector<8x128xf32>
    %c0_19 = arith.constant 0 : index
    %c0_20 = arith.constant 0 : index
    %18 = vector.load %arg9[%c0_19, %c0_20] : memref<8x1xf32, #tpu.memory_space<vmem>>, vector<8x1xf32>
    %19 = vector.broadcast %18 : vector<8x1xf32> to vector<8x128xf32>
    %20 = arith.addf %17, %19 : vector<8x128xf32>
    %c0_21 = arith.constant 0 : index
    %c0_22 = arith.constant 0 : index
    %21 = vector.load %arg10[%c0_21, %c0_22] : memref<8x128xf32, #tpu.memory_space<vmem>>, vector<8x128xf32>
    tpu.vector_store %arg10[%c0_21, %c0_22], %20 {strides = array<i32>} : memref<8x128xf32, #tpu.memory_space<vmem>>, vector<8x128xf32>,
    return
  }
  func.func @transform_0(%arg0: i32) -> (i32, i32) {
    %c0_i32 = arith.constant 0 : i32
    %c0_i32_0 = arith.constant 0 : i32
    return %c0_i32, %arg0 : i32, i32
  }
  func.func @transform_1(%arg0: i32) -> (i32, i32) {
    %c0_i32 = arith.constant 0 : i32
    %c0_i32_0 = arith.constant 0 : i32
    return %c0_i32, %arg0 : i32, i32
  }
  func.func @transform_2(%arg0: i32) -> (i32, i32) {
    %c0_i32 = arith.constant 0 : i32
    %c0_i32_0 = arith.constant 0 : i32
    return %c0_i32, %arg0 : i32, i32
  }
  func.func @transform_3(%arg0: i32) -> (i32, i32) {
    %c0_i32 = arith.constant 0 : i32
    %c0_i32_0 = arith.constant 0 : i32
    %c0_i32_1 = arith.constant 0 : i32
    return %c0_i32, %c0_i32_0 : i32, i32
  }
  func.func @transform_4(%arg0: i32) -> (i32, i32) {
    %c0_i32 = arith.constant 0 : i32
    %c0_i32_0 = arith.constant 0 : i32
    %c0_i32_1 = arith.constant 0 : i32
    return %c0_i32, %c0_i32_0 : i32, i32
  }
  func.func @transform_5(%arg0: i32) -> (i32, i32) {
    %c0_i32 = arith.constant 0 : i32
    %c0_i32_0 = arith.constant 0 : i32
    %c0_i32_1 = arith.constant 0 : i32
    return %c0_i32, %c0_i32_0 : i32, i32
  }
  func.func @transform_6(%arg0: i32) -> (i32, i32) {
    %c0_i32 = arith.constant 0 : i32
    %c0_i32_0 = arith.constant 0 : i32
    %c0_i32_1 = arith.constant 0 : i32
    return %c0_i32, %c0_i32_0 : i32, i32
  }
  func.func @transform_7(%arg0: i32) -> (i32, i32) {
    %c0_i32 = arith.constant 0 : i32
    %c0_i32_0 = arith.constant 0 : i32
    %c0_i32_1 = arith.constant 0 : i32
    return %c0_i32, %c0_i32_0 : i32, i32
  }
  func.func @transform_8(%arg0: i32) -> (i32, i32) {
    %c0_i32 = arith.constant 0 : i32
    %c0_i32_0 = arith.constant 0 : i32
    %c0_i32_1 = arith.constant 0 : i32
    return %c0_i32, %c0_i32_0 : i32, i32
  }
  func.func @transform_9(%arg0: i32) -> (i32, i32) {
    %c0_i32 = arith.constant 0 : i32
    %c0_i32_0 = arith.constant 0 : i32
    return %c0_i32, %arg0 : i32, i32
  }
}

</mosaic_0001>

<bundles_post_ra>
// kernel: tpu_custom_call.1
= control target key start
LH: loop header
LB: loop body
LE: loop exit
PB: predicated region body
PF: predicated region fallthrough
CT: control target
= control target key end

     0   :  { %vm56_vm0 = vcmask 1043456   ;;  %vm43_vm1 = vcmask 31744   ;;  %s719_s0 = inlined_call_operand.vmem [shape: f32[4,128], index: 0, kind: input, shape index: {}]   ;;  %s720_s1 = inlined_call_operand.vmem [shape: f32[4,128], index: 1, kind: input, shape index: {}]   ;;  %s721_s2 = inlined_call_operand.vmem [shape: f32[4,128], index: 2, kind: input, shape index: {}]   ;;  %s722_s3 = inlined_call_operand.vmem [shape: f32[32,4], index: 3, kind: input, shape index: {}]   ;;  %s723_s4 = inlined_call_operand.vmem [shape: f32[32,4], index: 4, kind: input, shape index: {}]   ;;  %s724_s5 = inlined_call_operand.vmem [shape: f32[32,4], index: 5, kind: input, shape index: {}]   ;;  %s725_s6 = inlined_call_operand.vmem [shape: f32[32,1], index: 6, kind: input, shape index: {}]   ;;  %s726_s7 = inlined_call_operand.vmem [shape: f32[8,32], index: 7, kind: input, shape index: {}]   ;;  %s727_s8 = inlined_call_operand.vmem [shape: f32[8,1], index: 8, kind: input, shape index: {}]   ;;  %s728_s9 = inlined_call_operand.hbm [shape: f32[8,128], index: 9, kind: output, shape index: {}]  }
   0x1   :  { %v42_v0 = vld [vmem:[%s720_s1] sm:$0xf]  ;;  %v39_v4 = vld [vmem:[%s723_s4 + $0x8] sm:$0xff]  ;;  %v40_v7 = vld [vmem:[%s723_s4 + $0x10] sm:$0xff] }
   0x2   :  { %v37_v1 = vld [vmem:[%s719_s0] sm:$0xf]  ;;  %518 = vmatprep.subr.msk.mxu0 %vm56_vm0, %v42_v0  ;;  %v34_v5 = vld [vmem:[%s722_s3 + $0x8] sm:$0xff]  ;;  %v35_v8 = vld [vmem:[%s722_s3 + $0x10] sm:$0xff] }
   0x3   :  { %v38_v2 = vld [vmem:[%s723_s4] sm:$0xff]  ;;  %526 = vmatprep.subr.msk.mxu1 %vm56_vm0, %v37_v1  ;;  %519 = vmatpush3.msk.msra.mxu0 %vm56_vm0, %v42_v0  ;;  %v41_v9 = vld [vmem:[%s723_s4 + $0x18] sm:$0xff] }
   0x4   :  { %v33_v3 = vld [vmem:[%s722_s3] sm:$0xff]  ;;  %520 = vmatprep.mubr.msk.f32.mxu0 %vm43_vm1, %v38_v2  ;;  %527 = vmatpush3.msk.msra.mxu1 %vm56_vm0, %v37_v1  ;;  %v36_v10 = vld [vmem:[%s722_s3 + $0x18] sm:$0xff] }
   0x5   :  { %v249_v6 = vld [vmem:[%s721_s2] sm:$0xf]  ;;  %528 = vmatprep.mubr.msk.f32.mxu1 %vm43_vm1, %v33_v3  ;;  %521 = vmatmul.mubr.msk.f32.vlgmr.msra.gmra.mxu0 %vm43_vm1, %v39_v4  ;;  %v357_v12 = vld [vmem:[%s725_s6 + $0x18] sm:$0xff] }
   0x6   :  { %529 = vmatmul.mubr.msk.f32.vlgmr.msra.gmra.mxu1 %vm43_vm1, %v34_v5  ;;  %534 = vmatprep.subr.msk.mxu0 %vm56_vm0, %v249_v6  ;;  %v245_v11 = vld [vmem:[%s724_s5] sm:$0xff] }
   0x7   :  { %523 = vmatprep.mubr.msk.f32.mxu0 %vm43_vm1, %v40_v7  ;;  %535 = vmatpush3.msk.msra.mxu0 %vm56_vm0, %v249_v6 }
   0x8   :  { %531 = vmatprep.mubr.msk.f32.mxu1 %vm43_vm1, %v35_v8 }
   0x9   :  { %14 = vsyncpa [#allocation3], 0  ;;  %v581_v13 = vmov 0   ;;  %v355_v14 = vld [vmem:[%s725_s6 + $0x8] sm:$0xff]  ;;  %524 = vmatmul.mubr.msk.f32.gmra.mxu0 %vm43_vm1, %v41_v9  ;;  %v247_v16 = vld [vmem:[%s724_s5 + $0x10] sm:$0xff]  ;;  %v582_v21 = vmov 0.0  }
   0xa   :  { %557 = vset.pattern.permute.xlu0 %v581_v13  ;;  %558 = vset.pattern.permute.xlu1 %v581_v13  ;;  %v246_v15 = vld [vmem:[%s724_s5 + $0x8] sm:$0xff]  ;;  %v356_v17 = vld [vmem:[%s725_s6 + $0x10] sm:$0xff]  ;;  %v354_v18 = vld [vmem:[%s725_s6] sm:$0xff]  ;;  %vm583_vm2 = vmmov 0   ;;  %vm393_vm3 = vcmask 261120  }
   0xb   :  { %532 = vmatmul.mubr.msk.f32.gmra.mxu1 %vm43_vm1, %v36_v10  ;;  %536 = vmatprep.mubr.msk.f32.mxu0 %vm43_vm1, %v245_v11  ;;  %v248_v19 = vld [vmem:[%s724_s5 + $0x18] sm:$0xff]  ;;  %v387_v20 = vld [vmem:[%s727_s8] sm:$0xff]  ;;  %s584_s8 = smov [#allocation2]  }
   0xc   :  { %375 = vperm.xlu0 %557, %v357_v12   ;;  %365 = vperm.xlu1 %558, %v355_v14   ;;  %v386_v54 = vld [vmem:[%s726_s7] sm:$0xff]  ;;  %s474_s21 = sshll.u32 %s584_s8, 4  ;;  %s475_s21 = int_to_ptr.vmem [resolvable:$true] %s474_s21 }
   0xd   :  { %537 = vmatmul.mubr.msk.f32.vlgmr.msra.gmra.mxu0 %vm43_vm1, %v246_v15  ;;  %542 = vmatprep.subr.mxu1 %v582_v21  ;;  %s559_s22 = scalar_lea.vmem %s475_s21, 128  ;;  %p564_p1 = scmp.lt.s32.totalorder %s475_s21, %s475_s21 }
   0xe   :  { %539 = vmatprep.mubr.msk.f32.mxu0 %vm43_vm1, %v247_v16  ;;  %550 = vmatprep.mubr.msk.f32.mxu1 %vm583_vm2, %v582_v21  ;;  %p560_p0 = scmp.ne.s32.totalorder %s475_s21, %s559_s22  ;;  %p565_p2 = scmp.lt.s32.totalorder %s559_s22, %s559_s22 }
  0x10   :  { %370 = vperm.xlu0 %557, %v356_v17   ;;  %360 = vperm.xlu1 %558, %v354_v18   ;;  %p566_p3 = por %p565_p2, %p564_p1 }
  0x11   :  { %540 = vmatmul.mubr.msk.f32.gmra.mxu0 %vm43_vm1, %v248_v19 }
  0x12   :  { %p567_p4 = pnand %p566_p3, %p560_p0 }
  0x14   :  { %390 = vperm.xlu0 %557, %v387_v20  }
  0x87   :  { %v376_v30 = vpop.permute.xlu0 %375  ;;  %v366_v31 = vpop.permute.xlu1 %365 }
  0x8b   :  { %v371_v45 = vpop.permute.xlu0 %370  ;;  %v361_v46 = vpop.permute.xlu1 %360 }
  0x8f   :  { %v391_v55 = vpop.permute.xlu0 %390 }
  0xc5   :  { %v522_v22 = vpop.f32.mrf.mxu0 }
  0xc6   :  { %v530_v23 = vpop.f32.mrf.mxu1 }
  0xc7   :  { %v126_v24 = vpop.f32.mrf.mxu0  ;;  %v232_v34 = vadd.f32 %v530_v23, %v522_v22 }
  0xc8   :  { %v226_v25 = vpop.f32.mrf.mxu1 }
  0xc9   :  { %v525_v26 = vpop.f32.mrf.mxu0  ;;  %v227_v37 = vadd.f32 %v226_v25, %v126_v24 }
  0xcb   :  { %v533_v27 = vpop.f32.mrf.mxu1  ;;  %v136_v28 = vpop.f32.mrf.mxu0 }
  0xcc   :  { %v242_v35 = vadd.f32 %v533_v27, %v525_v26 }
  0xcd   :  { %v538_v29 = vpop.f32.mrf.mxu0  ;;  %v236_v32 = vpop.f32.mrf.mxu1 }
  0xce   :  { %v237_v38 = vadd.f32 %v236_v32, %v136_v28  ;;  %v351_v39 = vadd.f32 %v538_v29, %v232_v34 }
  0xcf   :  { %v331_v33 = vpop.f32.mrf.mxu0 }
  0xd0   :  { %v350_v42 = vadd.f32 %v331_v33, %v227_v37  ;;  %v379_v47 = vadd.f32 %v366_v31, %v351_v39 }
  0xd1   :  { %v541_v36 = vpop.f32.mrf.mxu0 }
  0xd2   :  { %v353_v40 = vadd.f32 %v541_v36, %v242_v35  ;;  %v378_v50 = vadd.f32 %v361_v46, %v350_v42  ;;  %v383_v52 = vmax.f32 %v379_v47, 0.0 }
  0xd3   :  { %v341_v41 = vpop.f32.mrf.mxu0 }
  0xd4   :  { %v381_v43 = vadd.f32 %v376_v30, %v353_v40  ;;  %v352_v44 = vadd.f32 %v341_v41, %v237_v38  ;;  %v382_v53 = vmax.f32 %v378_v50, 0.0 }
  0xd6   :  { %v385_v48 = vmax.f32 %v381_v43, 0.0  ;;  %v380_v49 = vadd.f32 %v371_v45, %v352_v44 }
  0xd8   :  { %v384_v51 = vmax.f32 %v380_v49, 0.0  ;;  %543 = vmatpush3.msra.mxu1 %v385_v48 }
  0xd9   :  { %544 = vmatprep.subr.mxu1 %v582_v21 }
  0xda   :  { %545 = vmatpush3.msra.mxu1 %v384_v51 }
  0xdb   :  { %546 = vmatprep.subr.mxu1 %v582_v21 }
  0xdc   :  { %547 = vmatpush3.msra.mxu1 %v383_v52 }
  0xdd   :  { %548 = vmatprep.subr.mxu1 %v582_v21 }
  0xde   :  { %549 = vmatpush3.msra.mxu1 %v382_v53 }
  0xdf   :  { %551 = vmatmul.mubr.msk.f32.vlgmr.msra.gmra.mxu1 %vm393_vm3, %v386_v54 }
 0x19f   :  { %v463_v56 = vpop.f32.mrf.mxu1 }
 0x1a0   :  { %v464_v57 = vadd.f32 %v463_v56, %v391_v55 }
 0x1a1   :  { %v552_v58 = vpop.f32.mrf.mxu1 }
 0x1a2   :  { %467 = vst [vmem:[#allocation2] sm:$0xff] %v464_v57 }
 0x1a3   :  { %570 = shalt.err (!%p567_p4)
}
 0x1a4   :  { %477 = dma.vmem_to_hbm [thread:$0]  %s475_s21, 128, %s728_s9, [#allocation3]  }
 0x1a5   :  { %579 = dma.done.wait [#allocation3], 128  }
 0x1a6   :  { %580 = vsyncadd [#allocation3], 4294967168 }
 0x1a7   :  { %481 = vsyncpa [#allocation3], 1 }

</bundles_post_ra>
